<compile_context>
chip_gen: v7x
topology: tpu7x:2x2x1
jax: 0.10.0
libtpu: 0.0.40
codegen_flags: <defaults>
</compile_context>

<pallas_src>
import functools

import jax
import jax.numpy as jnp
from jax import lax
from jax.experimental import pallas as pl
from jax.experimental.pallas import tpu as pltpu


_VMEM_LIMIT_BYTES = 32 * 1024 * 1024
_TILE_BYTES_CAP = 4 * 1024 * 1024       # per-tile cap for the streaming path
_FUSED_SLAB_LIMIT = 4 * 1024 * 1024     # per-batch (C, S) slab cap for fusion


# --------------------------------------------------------------------------
# Fused single-pass kernel: mean + excitation MLP + scale, one batch per step
# --------------------------------------------------------------------------
def _fused_kernel(x_ref, w1t_ref, w2_ref, o_ref, *, inv_s):
    # x_ref : (1, C, S)   one batch's full slab (resident in VMEM)
    # w1t_ref: (C, Cr)    W1 transposed;  w2_ref: (C, Cr)
    # o_ref : (1, C, S)
    x = x_ref[0]                                                      # (C, S)
    # squeeze: per-channel mean (f32, exact w.r.t. true S)
    m = jnp.sum(x.astype(jnp.float32), axis=-1, keepdims=True) * inv_s   # (C, 1)
    # excitation as VPU broadcast-multiplies + XLU reduces (no N=1 matvec):
    #   h[1, Cr] = relu( sum_C  W1^T[C, Cr] * m[C, 1] )
    #   s[C, 1]  = sigmoid( sum_Cr W2[C, Cr] * h[1, Cr] )
    h = jnp.maximum(
        jnp.sum(w1t_ref[...].astype(jnp.float32) * m, axis=0, keepdims=True),
        0.0)                                                          # (1, Cr)
    s = jax.nn.sigmoid(
        jnp.sum(w2_ref[...].astype(jnp.float32) * h, axis=-1, keepdims=True))  # (C, 1)
    o_ref[0] = (x * s.astype(x.dtype)).astype(o_ref.dtype)


# --------------------------------------------------------------------------
# Pass 1 (two-pass path): per-(batch, channel) mean over flattened spatial
# --------------------------------------------------------------------------
def _mean_kernel(x_ref, m_ref, acc_ref, *, n_chunks, inv_s):
    # x_ref : (1, C, TS)  current (batch, spatial-tile) block, TS = n_chunks*128
    # m_ref : (1, C, 1)   per-batch channel means (written at last S step)
    # acc_ref: (C, 128)   f32 VMEM accumulator of lane-folded partial sums
    s_idx = pl.program_id(1)

    @pl.when(s_idx == 0)
    def _init():
        acc_ref[...] = jnp.zeros_like(acc_ref)

    # Staged reduction: fold the lane axis 128 lanes at a time with VPU adds.
    # Bounded-unroll fori_loop keeps vreg live ranges small (review item).
    def body(i, acc):
        off = pl.multiple_of(i * 128, 128)
        return acc + x_ref[0, :, pl.ds(off, 128)].astype(jnp.float32)

    acc_ref[...] = lax.fori_loop(0, n_chunks, body, acc_ref[...],
                                 unroll=min(4, max(n_chunks, 1)))

    @pl.when(s_idx == pl.num_programs(1) - 1)
    def _finalize():
        total = jnp.sum(acc_ref[...], axis=-1, keepdims=True)          # (C, 1)
        m_ref[0] = (total * inv_s).astype(m_ref.dtype)


# --------------------------------------------------------------------------
# Pass 2 (two-pass path): out = x * per-channel weights (pure HBM stream)
# --------------------------------------------------------------------------
def _scale_kernel(s_ref, x_ref, o_ref):
    # s_ref: (1, C, 1) per-batch channel weights; x_ref/o_ref: (1, C, TS)
    o_ref[0] = (x_ref[0] * s_ref[0]).astype(o_ref.dtype)


def _pick_s_tile(s_pad, c, itemsize, max_tile_bytes=_TILE_BYTES_CAP):
    """Largest multiple of 128 dividing s_pad with C*TS*itemsize <= cap.
    s_pad is always a multiple of 128, so 128 is a valid fallback."""
    max_lanes = max(128, (max_tile_bytes // max(c * itemsize, 1)) // 128 * 128)
    best = 128
    t = 128
    while t <= min(s_pad, max_lanes):
        if s_pad % t == 0:
            best = t
        t += 128
    return best


def _se3d_fused(x_flat, w1, w2, dt):
    B, C, S = x_flat.shape
    Cr = w1.shape[0]
    itemsize = jnp.dtype(dt).itemsize
    w1t = jnp.transpose(w1)                                            # (C, Cr)
    return pl.pallas_call(
        functools.partial(_fused_kernel, inv_s=1.0 / S),
        out_shape=jax.ShapeDtypeStruct((B, C, S), dt),
        grid_spec=pltpu.PrefetchScalarGridSpec(
            num_scalar_prefetch=0,
            grid=(B,),
            in_specs=[
                pl.BlockSpec((1, C, S), lambda b: (b, 0, 0)),          # x slab
                pl.BlockSpec((C, Cr), lambda b: (0, 0)),               # W1^T
                pl.BlockSpec((C, Cr), lambda b: (0, 0)),               # W2
            ],
            out_specs=pl.BlockSpec((1, C, S), lambda b: (b, 0, 0)),
        ),
        compiler_params=pltpu.CompilerParams(
            dimension_semantics=("parallel",),
            vmem_limit_bytes=_VMEM_LIMIT_BYTES),
        cost_estimate=pl.CostEstimate(
            flops=3 * B * C * S, transcendentals=B * C,
            bytes_accessed=2 * B * C * S * itemsize),
    )(x_flat, w1t, w2)


def _se3d_two_pass(x_pad, w1, w2, dt, s_true):
    B, C, S_pad = x_pad.shape
    itemsize = jnp.dtype(dt).itemsize
    ts = _pick_s_tile(S_pad, C, itemsize)
    n_chunks = ts // 128
    n_s_tiles = S_pad // ts

    # ---- pass 1: per-(batch, channel) means (padded zeros contribute 0) ----
    means = pl.pallas_call(
        functools.partial(_mean_kernel, n_chunks=n_chunks, inv_s=1.0 / s_true),
        out_shape=jax.ShapeDtypeStruct((B, C, 1), jnp.float32),
        grid_spec=pltpu.PrefetchScalarGridSpec(
            num_scalar_prefetch=0,
            grid=(B, n_s_tiles),
            in_specs=[pl.BlockSpec((1, C, ts), lambda b, s: (b, 0, s))],
            out_specs=pl.BlockSpec((1, C, 1), lambda b, s: (b, 0, 0)),
            scratch_shapes=[pltpu.VMEM((C, 128), jnp.float32)],
        ),
        compiler_params=pltpu.CompilerParams(
            dimension_semantics=("parallel", "arbitrary"),
            vmem_limit_bytes=_VMEM_LIMIT_BYTES),
        cost_estimate=pl.CostEstimate(
            flops=B * C * S_pad, transcendentals=0,
            bytes_accessed=B * C * S_pad * itemsize),
    )(x_pad)

    # ---- excitation: one batched matmul hoisted out of the grid loop -------
    m = means[:, :, 0]                                          # (B, C)  f32
    h = jnp.maximum(m @ w1.T.astype(jnp.float32), 0.0)          # (B, Cr)
    scales = jax.nn.sigmoid(h @ w2.T.astype(jnp.float32))       # (B, C)
    scales = scales.astype(dt)[:, :, None]                      # (B, C, 1)

    # ---- pass 2: lane-dense streaming scale, fresh output (no aliasing) ----
    out_flat = pl.pallas_call(
        _scale_kernel,
        out_shape=jax.ShapeDtypeStruct((B, C, S_pad), dt),
        grid_spec=pltpu.PrefetchScalarGridSpec(
            num_scalar_prefetch=0,
            grid=(B, n_s_tiles),
            in_specs=[
                pl.BlockSpec((1, C, 1), lambda b, s: (b, 0, 0)),    # scales
                pl.BlockSpec((1, C, ts), lambda b, s: (b, 0, s)),   # x tile
            ],
            out_specs=pl.BlockSpec((1, C, ts), lambda b, s: (b, 0, s)),
        ),
        compiler_params=pltpu.CompilerParams(
            dimension_semantics=("parallel", "parallel"),
            vmem_limit_bytes=_VMEM_LIMIT_BYTES),
        cost_estimate=pl.CostEstimate(
            flops=B * C * S_pad, transcendentals=0,
            bytes_accessed=2 * B * C * S_pad * itemsize),
    )(scales, x_pad)
    return out_flat


@functools.partial(jax.jit, static_argnames=("fused_slab_limit",))
def se3d_pallas(x, w1, w2, *, fused_slab_limit=_FUSED_SLAB_LIMIT):
    """x: (B, C, D, H, W); w1: (C//r, C); w2: (C, C//r)  (PyTorch Linear layout)."""
    B, C, D, H, W = x.shape
    S = D * H * W
    dt = x.dtype
    itemsize = jnp.dtype(dt).itemsize
    x_flat = x.reshape(B, C, S)

    slab_bytes = C * S * itemsize
    if slab_bytes <= fused_slab_limit:
        # Fused single pass: 2x HBM traffic, one dispatch.
        out_flat = _se3d_fused(x_flat, w1, w2, dt)
        return out_flat.reshape(B, C, D, H, W)

    # Streaming two-pass path: pad S to a multiple of 128 (mean uses true S).
    S_pad = (S + 127) // 128 * 128
    x_pad = x_flat if S_pad == S else jnp.pad(
        x_flat, ((0, 0), (0, 0), (0, S_pad - S)))
    out_flat = _se3d_two_pass(x_pad, w1, w2, dt, S)
    if S_pad != S:
        out_flat = out_flat[:, :, :S]
    return out_flat.reshape(B, C, D, H, W)


def se3d_reference(x, w1, w2):
    B, C = x.shape[:2]
    m = x.reshape(B, C, -1).mean(-1)                 # (B, C)
    h = jnp.maximum(m @ w1.T, 0.0)                   # (B, C//r)
    s = jax.nn.sigmoid(h @ w2.T)                     # (B, C)
    return x * s[:, :, None, None, None]


if __name__ == "__main__":
    B, C, red = 2, 16, 8
    Cr = C // red

    key = jax.random.PRNGKey(0)
    kx, k1, k2, kx2 = jax.random.split(key, 4)
    # PyTorch Linear weight shapes: (out_features, in_features), no bias
    w1 = jax.random.normal(k1, (Cr, C), dtype=jnp.float32) * 0.1
    w2 = jax.random.normal(k2, (C, Cr), dtype=jnp.float32) * 0.1

    # --- fused single-pass path (small slab) ---
    D = H = W = 8
    x = jax.random.normal(kx, (B, C, D, H, W), dtype=jnp.float32)
    out = jax.block_until_ready(se3d_pallas(x, w1, w2))
    ref = se3d_reference(x, w1, w2)
    assert out.shape == x.shape
    assert jnp.allclose(out, ref, atol=1e-5, rtol=1e-5)

    # --- two-pass streaming path (forced) with S a multiple of 128 ---
    out2 = jax.block_until_ready(se3d_pallas(x, w1, w2, fused_slab_limit=0))
    assert jnp.allclose(out2, ref, atol=1e-5, rtol=1e-5)

    # --- two-pass streaming path (forced) with awkward S -> padded to 128 ---
    D2, H2, W2 = 4, 5, 7                                   # S = 140 -> pad 256
    x3 = jax.random.normal(kx2, (B, C, D2, H2, W2), dtype=jnp.float32)
    out3 = jax.block_until_ready(se3d_pallas(x3, w1, w2, fused_slab_limit=0))
    ref3 = se3d_reference(x3, w1, w2)
    assert out3.shape == x3.shape
    assert jnp.allclose(out3, ref3, atol=1e-5, rtol=1e-5)

    print("KERNEL_OK")
</pallas_src>

<mosaic_0001>
module attributes {stable_mosaic.version = 11 : i64} {
  func.func @_fused_kernel(%arg0: i32, %arg1: memref<1x16x512xf32, #tpu.memory_space<vmem>>, %arg2: memref<16x2xf32, #tpu.memory_space<vmem>>, %arg3: memref<16x2xf32, #tpu.memory_space<vmem>>, %arg4: memref<1x16x512xf32, #tpu.memory_space<vmem>>) attributes {dimension_semantics = [#tpu.dimension_semantics<parallel>], iteration_bounds = array<i64: 2>, scalar_prefetch = 0 : i64, scratch_operands = 0 : i64, tpu.core_type = #tpu.core_type<tc>, window_params = [{transform_indices = @transform_0, window_bounds = array<i64: 1, 16, 512>}, {pipeline_mode = #tpu.pipeline_mode<synchronous>, transform_indices = @transform_1, window_bounds = array<i64: 16, 2>}, {pipeline_mode = #tpu.pipeline_mode<synchronous>, transform_indices = @transform_2, window_bounds = array<i64: 16, 2>}, {transform_indices = @transform_3, window_bounds = array<i64: 1, 16, 512>}]} {
    %c0 = arith.constant 0 : index
    %c0_0 = arith.constant 0 : index
    %c0_1 = arith.constant 0 : index
    %0 = vector.load %arg1[%c0, %c0_0, %c0_1] : memref<1x16x512xf32, #tpu.memory_space<vmem>>, vector<1x16x512xf32>
    %1 = vector.shape_cast %0 : vector<1x16x512xf32> to vector<16x512xf32>
    %cst = arith.constant dense<0.000000e+00> : vector<16xf32>
    %2 = vector.multi_reduction <add>, %1, %cst [1] : vector<16x512xf32> to vector<16xf32>
    %3 = vector.shape_cast %2 : vector<16xf32> to vector<16x1xf32>
    %cst_2 = arith.constant 0.001953125 : f32
    %4 = vector.broadcast %cst_2 : f32 to vector<16x1xf32>
    %5 = arith.mulf %3, %4 : vector<16x1xf32>
    %c0_3 = arith.constant 0 : index
    %c0_4 = arith.constant 0 : index
    %6 = vector.load %arg2[%c0_3, %c0_4] : memref<16x2xf32, #tpu.memory_space<vmem>>, vector<16x2xf32>
    %7 = vector.broadcast %5 : vector<16x1xf32> to vector<16x2xf32>
    %8 = arith.mulf %6, %7 : vector<16x2xf32>
    %cst_5 = arith.constant dense<0.000000e+00> : vector<2xf32>
    %9 = vector.multi_reduction <add>, %8, %cst_5 [0] : vector<16x2xf32> to vector<2xf32>
    %10 = vector.shape_cast %9 : vector<2xf32> to vector<1x2xf32>
    %cst_6 = arith.constant 0.000000e+00 : f32
    %11 = vector.broadcast %cst_6 : f32 to vector<1x2xf32>
    %12 = arith.maximumf %10, %11 : vector<1x2xf32>
    %c0_7 = arith.constant 0 : index
    %c0_8 = arith.constant 0 : index
    %13 = vector.load %arg3[%c0_7, %c0_8] : memref<16x2xf32, #tpu.memory_space<vmem>>, vector<16x2xf32>
    %14 = vector.broadcast %12 : vector<1x2xf32> to vector<16x2xf32>
    %15 = arith.mulf %13, %14 : vector<16x2xf32>
    %cst_9 = arith.constant dense<0.000000e+00> : vector<16xf32>
    %16 = vector.multi_reduction <add>, %15, %cst_9 [1] : vector<16x2xf32> to vector<16xf32>
    %17 = vector.shape_cast %16 : vector<16xf32> to vector<16x1xf32>
    %18 = arith.negf %17 : vector<16x1xf32>
    %19 = math.exp %18 : vector<16x1xf32>
    %cst_10 = arith.constant 1.000000e+00 : f32
    %20 = vector.broadcast %cst_10 : f32 to vector<16x1xf32>
    %21 = arith.addf %20, %19 : vector<16x1xf32>
    %22 = arith.divf %20, %21 : vector<16x1xf32>
    %23 = vector.broadcast %22 : vector<16x1xf32> to vector<16x512xf32>
    %24 = arith.mulf %1, %23 : vector<16x512xf32>
    %c0_11 = arith.constant 0 : index
    %c0_12 = arith.constant 0 : index
    %c0_13 = arith.constant 0 : index
    %25 = vector.load %arg4[%c0_11, %c0_12, %c0_13] : memref<1x16x512xf32, #tpu.memory_space<vmem>>, vector<1x16x512xf32>
    %26 = vector.shape_cast %25 : vector<1x16x512xf32> to vector<16x512xf32>
    %27 = vector.shape_cast %24 : vector<16x512xf32> to vector<1x16x512xf32>
    tpu.vector_store %arg4[%c0_11, %c0_12, %c0_13], %27 {strides = array<i32>} : memref<1x16x512xf32, #tpu.memory_space<vmem>>, vector<1x16x512xf32>,
    return
  }
  func.func @transform_0(%arg0: i32) -> (i32, i32, i32) {
    %c0_i32 = arith.constant 0 : i32
    %c0_i32_0 = arith.constant 0 : i32
    %c0_i32_1 = arith.constant 0 : i32
    return %arg0, %c0_i32, %c0_i32_0 : i32, i32, i32
  }
  func.func @transform_1(%arg0: i32) -> (i32, i32) {
    %c0_i32 = arith.constant 0 : i32
    %c0_i32_0 = arith.constant 0 : i32
    %c0_i32_1 = arith.constant 0 : i32
    return %c0_i32, %c0_i32_0 : i32, i32
  }
  func.func @transform_2(%arg0: i32) -> (i32, i32) {
    %c0_i32 = arith.constant 0 : i32
    %c0_i32_0 = arith.constant 0 : i32
    %c0_i32_1 = arith.constant 0 : i32
    return %c0_i32, %c0_i32_0 : i32, i32
  }
  func.func @transform_3(%arg0: i32) -> (i32, i32, i32) {
    %c0_i32 = arith.constant 0 : i32
    %c0_i32_0 = arith.constant 0 : i32
    %c0_i32_1 = arith.constant 0 : i32
    return %arg0, %c0_i32, %c0_i32_0 : i32, i32, i32
  }
}

</mosaic_0001>

<bundles_post_ra>
// kernel: se3d_pallas.1
= control target key start
LH: loop header
LB: loop body
LE: loop exit
PB: predicated region body
PF: predicated region fallthrough
CT: control target
= control target key end

     0   :  { %s358_s12 = smov 0   ;;  %s398_s0 = inlined_call_operand.vmem [shape: f32[2,16,512], index: 0, kind: input, shape index: {}]   ;;  %s399_s1 = inlined_call_operand.vmem [shape: f32[16,2], index: 1, kind: input, shape index: {}]   ;;  %s400_s2 = inlined_call_operand.vmem [shape: f32[16,2], index: 2, kind: input, shape index: {}]   ;;  %s401_s3 = inlined_call_operand.vmem [shape: f32[2,16,512], index: 3, kind: output, shape index: {}]  }
   0x1 LB: > { %s299_s13 = sadd.s32 4294967295, %s336_s12   ;;  %p303_p0 = scmp.ge.s32.totalorder %s336_s12, 1  ;;  %s336_s12 = sphi %s358_s12, %s13_s12  }
   0x2   : > { %p137_p1 = scmp.lt.s32.totalorder %s336_s12, 3 }
   0x4   : > { %p138_p2 = pnand %p303_p0, %p137_p1 }
   0x5   : > { %p161_p3 = scmp.lt.s32.totalorder (!%p138_p2), %s299_s13, 1  ;;  %v191_v16 = vld [vmem:[%s399_s1] sm:$0xff] (!%p138_p2)  ;;  %v192_v17 = vld [vmem:[%s399_s1 + $0x8] sm:$0xff] (!%p138_p2)  ;;  %vm195_vm0 = vcmask (!%p138_p2), 15360  }
   0x6   : > { %141 = sbr.rel (%p138_p2) target bundleno = 369 (0x171), region = 32  ;;  %v206_v31 = vld [vmem:[%s400_s2] sm:$0xff] (!%p138_p2)  ;;  %v207_v33 = vld [vmem:[%s400_s2 + $0x8] sm:$0xff] (!%p138_p2) }
   0xd   : > { %s403_s13 = smov (!%p161_p3, %s299_s13), 1 }
   0xe   : > { %s312_s14 = sshll.u32 %s403_s13, 6 }
   0xf   : > { %s165_s17 = scalar_lea.vmem %s398_s0, %s312_s14  ;;  %s170_s28 = scalar_lea.vmem %s401_s3, %s312_s14 }
  0x10   : > { %v171_v0 = vld [vmem:[%s165_s17] sm:$0xff]  ;;  %v172_v1 = vld [vmem:[%s165_s17 + $0x8] sm:$0xff]  ;;  %v173_v2 = vld [vmem:[%s165_s17 + $0x10] sm:$0xff] }
  0x11   : > { %v179_v3 = vadd.f32 %v172_v1, %v171_v0  ;;  %v175_v4 = vld [vmem:[%s165_s17 + $0x20] sm:$0xff]  ;;  %v176_v5 = vld [vmem:[%s165_s17 + $0x28] sm:$0xff]  ;;  %v174_v6 = vld [vmem:[%s165_s17 + $0x18] sm:$0xff] }
  0x12   : > { %v177_v7 = vld [vmem:[%s165_s17 + $0x30] sm:$0xff]  ;;  %v184_v8 = vadd.f32 %v176_v5, %v175_v4  ;;  %v178_v10 = vld [vmem:[%s165_s17 + $0x38] sm:$0xff] }
  0x13   : > { %v180_v9 = vadd.f32 %v179_v3, %v173_v2 }
  0x14   : > { %v185_v11 = vadd.f32 %v184_v8, %v177_v7 }
  0x15   : > { %v181_v12 = vadd.f32 %v180_v9, %v174_v6 }
  0x16   : > { %v186_v13 = vadd.f32 %v185_v11, %v178_v10 }
  0x17   : > { %182 = vadd.xlane.f32.xlu0 %v181_v12 }
  0x1b   : > { %187 = vadd.xlane.f32.xlu0 %v186_v13 }
  0xa4   : > { %v183_v14 = vpop.xlane.xlu0 %182 }
  0xa5   : > { %v189_v15 = vmul.f32 0.001953125, %v183_v14 }
  0xa7   : > { %v193_v19 = vmul.f32 %v191_v16, %v189_v15 }
  0xa8   : > { %v188_v18 = vpop.xlane.xlu0 %187 }
  0xa9   : > { %v190_v20 = vmul.f32 0.001953125, %v188_v18  ;;  %v196_v23 = vsel %vm195_vm0, %v193_v19, 0.0 }
  0xab   : > { %v194_v21 = vmul.f32 %v192_v17, %v190_v20 }
  0xad   : > { %v197_v22 = vsel %vm195_vm0, %v194_v21, 0.0 }
  0xae   : > { %v198_v24 = vadd.f32 %v197_v22, %v196_v23 }
  0xb0   : > { %v199_v25 = vrot.slane %v198_v24, 4 }
  0xb2   : > { %v200_v26 = vadd.f32 %v199_v25, %v198_v24 }
  0xb4   : > { %v201_v27 = vrot.slane %v200_v26, 2 }
  0xb6   : > { %v202_v28 = vadd.f32 %v201_v27, %v200_v26 }
  0xb8   : > { %v203_v29 = vrot.slane %v202_v28, 1 }
  0xba   : > { %v204_v30 = vadd.f32 %v203_v29, %v202_v28 }
  0xbc   : > { %v205_v32 = vmax.f32 %v204_v30, 0.0 }
  0xbe   : > { %v208_v34 = vmul.f32 %v206_v31, %v205_v32  ;;  %v209_v36 = vmul.f32 %v207_v33, %v205_v32 }
  0xc0   : > { %v210_v35 = vsel %vm195_vm0, %v208_v34, 0.0  ;;  %v213_v37 = vsel %vm195_vm0, %v209_v36, 0.0 }
  0xc1   : > { %211 = vadd.xlane.f32.xlu1 %v210_v35 }
  0xc5   : > { %214 = vadd.xlane.f32.xlu1 %v213_v37 }
 0x14e   : > { %v212_v38 = vpop.xlane.xlu1 %211 }
 0x14f   : > { %v308_v39 = vmul.f32 -1.442695, %v212_v38 }
 0x151   : > { %322 = vpow2.f32 %v308_v39 }
 0x152   : > { %v215_v40 = vpop.xlane.xlu1 %214 }
 0x153   : > { %v309_v41 = vmul.f32 -1.442695, %v215_v40 }
 0x155   : > { %324 = vpow2.f32 %v309_v41 }
 0x15b   : > { %v323_v42 = vpop.eup %322 }
 0x15c   : > { %v222_v43 = vadd.f32 1.0, %v323_v42 }
 0x15e   : > { %326 = vrcp.f32 %v222_v43 }
 0x15f   : > { %v325_v44 = vpop.eup %324 }
 0x160   : > { %v223_v45 = vadd.f32 1.0, %v325_v44 }
 0x162   : > { %328 = vrcp.f32 %v223_v45 }
 0x168   : > { %v327_v46 = vpop.eup %326 }
 0x169   : > { %v228_v47 = vmul.f32 %v327_v46, %v171_v0  ;;  %v229_v48 = vmul.f32 %v327_v46, %v172_v1  ;;  %v230_v49 = vmul.f32 %v327_v46, %v173_v2  ;;  %v231_v50 = vmul.f32 %v327_v46, %v174_v6 }
 0x16b   : > { %236 = vst [vmem:[%s170_s28] sm:$0xff] %v228_v47  ;;  %237 = vst [vmem:[%s170_s28 + $0x8] sm:$0xff] %v229_v48 }
 0x16c   : > { %238 = vst [vmem:[%s170_s28 + $0x10] sm:$0xff] %v230_v49  ;;  %239 = vst [vmem:[%s170_s28 + $0x18] sm:$0xff] %v231_v50  ;;  %v329_v51 = vpop.eup %328 }
 0x16d   : > { %v232_v52 = vmul.f32 %v329_v51, %v175_v4  ;;  %v233_v53 = vmul.f32 %v329_v51, %v176_v5  ;;  %v234_v54 = vmul.f32 %v329_v51, %v177_v7  ;;  %v235_v55 = vmul.f32 %v329_v51, %v178_v10 }
 0x16f   : > { %240 = vst [vmem:[%s170_s28 + $0x20] sm:$0xff] %v232_v52  ;;  %241 = vst [vmem:[%s170_s28 + $0x28] sm:$0xff] %v233_v53 }
 0x170   : > { %242 = vst [vmem:[%s170_s28 + $0x30] sm:$0xff] %v234_v54  ;;  %243 = vst [vmem:[%s170_s28 + $0x38] sm:$0xff] %v235_v55 }
 0x171 PF: > { %s13_s12 = sadd.s32 1, %s336_s12  }
 0x172   : > { %p10_p4 = scmp.ge.s32.totalorder %s13_s12, 4  }
 0x174   :  { %12 = sbr.rel (!%p10_p4) target bundleno = 1 (0x1), region = 62 }

</bundles_post_ra>
